<compile_context>
chip_gen: v7x
topology: tpu7x:2x2x1
jax: 0.10.0
libtpu: 0.0.40
codegen_flags: <defaults>
</compile_context>

<pallas_src>
import math

import jax
import jax.numpy as jnp
from jax.experimental import pallas as pl
from jax.experimental.pallas import tpu as pltpu


def _bert_attention_kernel(eps, scale):
    f32 = jnp.float32

    def kernel(xq_ref, xkv_ref,
               wq_ref, wk_ref, wv_ref, wo_ref,
               bq_ref, bk_ref, bv_ref, bo_ref,
               gamma_ref, beta_ref, o_ref):
        xq = xq_ref[0]                      # (tq, H)  query-row tile
        xkv = xkv_ref[0]                    # (S,  H)  full sequence for K/V

        # --- BertSelfAttention ---------------------------------------------
        q = jnp.dot(xq, wq_ref[...], preferred_element_type=f32) + bq_ref[...]
        k = jnp.dot(xkv, wk_ref[...], preferred_element_type=f32) + bk_ref[...]
        v = jnp.dot(xkv, wv_ref[...], preferred_element_type=f32) + bv_ref[...]

        # scores = Q K^T / sqrt(H)   -> (tq, S), contract on H (no explicit transpose)
        scores = jax.lax.dot_general(
            q, k, (((1,), (1,)), ((), ())), preferred_element_type=f32) * scale

        # Softmax over the key axis (attention_mask=None path; dropout = identity).
        # TODO(synk): XSoftmax masked-softmax variant when an attention_mask is given.
        m = jnp.max(scores, axis=-1, keepdims=True)
        e = jnp.exp(scores - m)
        probs = e / jnp.sum(e, axis=-1, keepdims=True)

        ctx = jnp.dot(probs, v, preferred_element_type=f32)          # (tq, H)

        # --- BertSelfOutput (dense + residual + LayerNorm) ------------------
        y = jnp.dot(ctx, wo_ref[...], preferred_element_type=f32) + bo_ref[...]
        z = y + xq.astype(f32)

        mean = jnp.mean(z, axis=-1, keepdims=True)
        centered = z - mean
        var = jnp.mean(centered * centered, axis=-1, keepdims=True)
        out = centered * jax.lax.rsqrt(var + eps) * gamma_ref[...] + beta_ref[...]

        o_ref[0] = out.astype(o_ref.dtype)

    return kernel


def bert_attention(x, wq, bq, wk, bk, wv, bv, wo, bo, gamma, beta,
                   eps=1e-12, compute_dtype=None):
    """Fused BertAttention forward.

    x:      (B, S, H)   hidden_states
    w*:     (H, H)      weights already laid out for x @ W (i.e. PyTorch weight.T)
    b*:     (H,)        biases
    gamma/beta: (H,)    LayerNorm params
    compute_dtype: optionally cast x / weights (e.g. jnp.bfloat16) for the MXU;
                   accumulation, softmax and LayerNorm stay in f32.
    """
    B, S, H = x.shape
    out_dtype = x.dtype
    scale = 1.0 / math.sqrt(H)

    if compute_dtype is not None:
        x_c = x.astype(compute_dtype)
        wq, wk, wv, wo = (w.astype(compute_dtype) for w in (wq, wk, wv, wo))
    else:
        x_c = x

    # Query-row tile: multiple of 8 (f32 sublane) or the full S extent.
    tq = S if S <= 256 else 256
    n_q = pl.cdiv(S, tq)

    b2 = lambda a: a.reshape(1, H).astype(jnp.float32)
    bq2, bk2, bv2, bo2 = b2(bq), b2(bk), b2(bv), b2(bo)
    g2, be2 = b2(gamma), b2(beta)

    resident = lambda b, q: (0, 0)

    out = pl.pallas_call(
        _bert_attention_kernel(eps, scale),
        out_shape=jax.ShapeDtypeStruct((B, S, H), out_dtype),
        grid_spec=pltpu.PrefetchScalarGridSpec(
            num_scalar_prefetch=0,
            grid=(B, n_q),
            in_specs=[
                pl.BlockSpec((1, tq, H), lambda b, q: (b, q, 0)),   # x (query rows)
                pl.BlockSpec((1, S, H), lambda b, q: (b, 0, 0)),    # x (K/V rows)
                pl.BlockSpec((H, H), resident),                     # Wq
                pl.BlockSpec((H, H), resident),                     # Wk
                pl.BlockSpec((H, H), resident),                     # Wv
                pl.BlockSpec((H, H), resident),                     # Wo
                pl.BlockSpec((1, H), resident),                     # bq
                pl.BlockSpec((1, H), resident),                     # bk
                pl.BlockSpec((1, H), resident),                     # bv
                pl.BlockSpec((1, H), resident),                     # bo
                pl.BlockSpec((1, H), resident),                     # gamma
                pl.BlockSpec((1, H), resident),                     # beta
            ],
            out_specs=pl.BlockSpec((1, tq, H), lambda b, q: (b, q, 0)),
        ),
        compiler_params=pltpu.CompilerParams(
            dimension_semantics=("parallel", "parallel")),
    )(x_c, x_c, wq, wk, wv, wo, bq2, bk2, bv2, bo2, g2, be2)

    return out


def bert_attention_ref(x, wq, bq, wk, bk, wv, bv, wo, bo, gamma, beta, eps=1e-12):
    H = x.shape[-1]
    q = x @ wq + bq
    k = x @ wk + bk
    v = x @ wv + bv
    scores = jnp.einsum("bqh,bkh->bqk", q, k) / math.sqrt(H)
    probs = jax.nn.softmax(scores, axis=-1)
    ctx = jnp.einsum("bqk,bkh->bqh", probs, v)
    y = ctx @ wo + bo
    z = y + x
    mean = jnp.mean(z, axis=-1, keepdims=True)
    var = jnp.mean((z - mean) ** 2, axis=-1, keepdims=True)
    return (z - mean) * jax.lax.rsqrt(var + eps) * gamma + beta


if __name__ == "__main__":
    # config.all_head_size = 32, layer_norm_eps = 1e-12, dropouts identity at eval.
    B, S, H = 2, 8, 32
    eps = 1e-12

    key = jax.random.PRNGKey(0)
    keys = jax.random.split(key, 9)

    x = jax.random.normal(keys[0], (B, S, H), dtype=jnp.float32)

    bound = 1.0 / math.sqrt(H)
    def lin(kw, kb):
        w = jax.random.uniform(kw, (H, H), minval=-bound, maxval=bound, dtype=jnp.float32)
        b = jax.random.uniform(kb, (H,), minval=-bound, maxval=bound, dtype=jnp.float32)
        return w, b

    wq, bq = lin(keys[1], keys[2])
    wk, bk = lin(keys[3], keys[4])
    wv, bv = lin(keys[5], keys[6])
    wo, bo = lin(keys[7], keys[8])
    gamma = jnp.ones((H,), dtype=jnp.float32)
    beta = jnp.zeros((H,), dtype=jnp.float32)

    out = bert_attention(x, wq, bq, wk, bk, wv, bv, wo, bo, gamma, beta, eps)
    out = jax.block_until_ready(out)

    ref = bert_attention_ref(x, wq, bq, wk, bk, wv, bv, wo, bo, gamma, beta, eps)
    assert out.shape == (B, S, H)
    assert jnp.allclose(out, ref, atol=1e-4, rtol=1e-4), float(jnp.max(jnp.abs(out - ref)))

    print("KERNEL_OK")
</pallas_src>

<mosaic_0001>
module attributes {stable_mosaic.version = 11 : i64} {
  func.func @kernel(%arg0: i32, %arg1: i32, %arg2: memref<1x8x32xf32, #tpu.memory_space<vmem>>, %arg3: memref<1x8x32xf32, #tpu.memory_space<vmem>>, %arg4: memref<32x32xf32, #tpu.memory_space<vmem>>, %arg5: memref<32x32xf32, #tpu.memory_space<vmem>>, %arg6: memref<32x32xf32, #tpu.memory_space<vmem>>, %arg7: memref<32x32xf32, #tpu.memory_space<vmem>>, %arg8: memref<1x32xf32, #tpu.memory_space<vmem>>, %arg9: memref<1x32xf32, #tpu.memory_space<vmem>>, %arg10: memref<1x32xf32, #tpu.memory_space<vmem>>, %arg11: memref<1x32xf32, #tpu.memory_space<vmem>>, %arg12: memref<1x32xf32, #tpu.memory_space<vmem>>, %arg13: memref<1x32xf32, #tpu.memory_space<vmem>>, %arg14: memref<1x8x32xf32, #tpu.memory_space<vmem>>) attributes {dimension_semantics = [#tpu.dimension_semantics<parallel>, #tpu.dimension_semantics<parallel>], iteration_bounds = array<i64: 2, 1>, scalar_prefetch = 0 : i64, scratch_operands = 0 : i64, tpu.core_type = #tpu.core_type<tc>, window_params = [{transform_indices = @transform_0, window_bounds = array<i64: 1, 8, 32>}, {transform_indices = @transform_1, window_bounds = array<i64: 1, 8, 32>}, {pipeline_mode = #tpu.pipeline_mode<synchronous>, transform_indices = @transform_2, window_bounds = array<i64: 32, 32>}, {pipeline_mode = #tpu.pipeline_mode<synchronous>, transform_indices = @transform_3, window_bounds = array<i64: 32, 32>}, {pipeline_mode = #tpu.pipeline_mode<synchronous>, transform_indices = @transform_4, window_bounds = array<i64: 32, 32>}, {pipeline_mode = #tpu.pipeline_mode<synchronous>, transform_indices = @transform_5, window_bounds = array<i64: 32, 32>}, {pipeline_mode = #tpu.pipeline_mode<synchronous>, transform_indices = @transform_6, window_bounds = array<i64: 1, 32>}, {pipeline_mode = #tpu.pipeline_mode<synchronous>, transform_indices = @transform_7, window_bounds = array<i64: 1, 32>}, {pipeline_mode = #tpu.pipeline_mode<synchronous>, transform_indices = @transform_8, window_bounds = array<i64: 1, 32>}, {pipeline_mode = #tpu.pipeline_mode<synchronous>, transform_indices = @transform_9, window_bounds = array<i64: 1, 32>}, {pipeline_mode = #tpu.pipeline_mode<synchronous>, transform_indices = @transform_10, window_bounds = array<i64: 1, 32>}, {pipeline_mode = #tpu.pipeline_mode<synchronous>, transform_indices = @transform_11, window_bounds = array<i64: 1, 32>}, {transform_indices = @transform_12, window_bounds = array<i64: 1, 8, 32>}]} {
    %c0 = arith.constant 0 : index
    %c0_0 = arith.constant 0 : index
    %c0_1 = arith.constant 0 : index
    %0 = vector.load %arg2[%c0, %c0_0, %c0_1] : memref<1x8x32xf32, #tpu.memory_space<vmem>>, vector<1x8x32xf32>
    %1 = vector.shape_cast %0 : vector<1x8x32xf32> to vector<8x32xf32>
    %c0_2 = arith.constant 0 : index
    %c0_3 = arith.constant 0 : index
    %c0_4 = arith.constant 0 : index
    %2 = vector.load %arg3[%c0_2, %c0_3, %c0_4] : memref<1x8x32xf32, #tpu.memory_space<vmem>>, vector<1x8x32xf32>
    %3 = vector.shape_cast %2 : vector<1x8x32xf32> to vector<8x32xf32>
    %c0_5 = arith.constant 0 : index
    %c0_6 = arith.constant 0 : index
    %4 = vector.load %arg4[%c0_5, %c0_6] : memref<32x32xf32, #tpu.memory_space<vmem>>, vector<32x32xf32>
    %cst = arith.constant dense<0.000000e+00> : vector<8x32xf32>
    %5 = tpu.matmul %1, %4, %cst {dimension_numbers = #tpu.dot_dimension_numbers<[1], [0], [0], [1], [0, 0, 1, 1], [], []>} : vector<8x32xf32>, vector<32x32xf32>, vector<8x32xf32> -> vector<8x32xf32>
    %c0_7 = arith.constant 0 : index
    %c0_8 = arith.constant 0 : index
    %6 = vector.load %arg8[%c0_7, %c0_8] : memref<1x32xf32, #tpu.memory_space<vmem>>, vector<1x32xf32>
    %7 = vector.broadcast %6 : vector<1x32xf32> to vector<8x32xf32>
    %8 = arith.addf %5, %7 : vector<8x32xf32>
    %c0_9 = arith.constant 0 : index
    %c0_10 = arith.constant 0 : index
    %9 = vector.load %arg5[%c0_9, %c0_10] : memref<32x32xf32, #tpu.memory_space<vmem>>, vector<32x32xf32>
    %cst_11 = arith.constant dense<0.000000e+00> : vector<8x32xf32>
    %10 = tpu.matmul %3, %9, %cst_11 {dimension_numbers = #tpu.dot_dimension_numbers<[1], [0], [0], [1], [0, 0, 1, 1], [], []>} : vector<8x32xf32>, vector<32x32xf32>, vector<8x32xf32> -> vector<8x32xf32>
    %c0_12 = arith.constant 0 : index
    %c0_13 = arith.constant 0 : index
    %11 = vector.load %arg9[%c0_12, %c0_13] : memref<1x32xf32, #tpu.memory_space<vmem>>, vector<1x32xf32>
    %12 = vector.broadcast %11 : vector<1x32xf32> to vector<8x32xf32>
    %13 = arith.addf %10, %12 : vector<8x32xf32>
    %c0_14 = arith.constant 0 : index
    %c0_15 = arith.constant 0 : index
    %14 = vector.load %arg6[%c0_14, %c0_15] : memref<32x32xf32, #tpu.memory_space<vmem>>, vector<32x32xf32>
    %cst_16 = arith.constant dense<0.000000e+00> : vector<8x32xf32>
    %15 = tpu.matmul %3, %14, %cst_16 {dimension_numbers = #tpu.dot_dimension_numbers<[1], [0], [0], [1], [0, 0, 1, 1], [], []>} : vector<8x32xf32>, vector<32x32xf32>, vector<8x32xf32> -> vector<8x32xf32>
    %c0_17 = arith.constant 0 : index
    %c0_18 = arith.constant 0 : index
    %16 = vector.load %arg10[%c0_17, %c0_18] : memref<1x32xf32, #tpu.memory_space<vmem>>, vector<1x32xf32>
    %17 = vector.broadcast %16 : vector<1x32xf32> to vector<8x32xf32>
    %18 = arith.addf %15, %17 : vector<8x32xf32>
    %cst_19 = arith.constant dense<0.000000e+00> : vector<8x8xf32>
    %19 = tpu.matmul %8, %13, %cst_19 {dimension_numbers = #tpu.dot_dimension_numbers<[1], [1], [0], [0], [0, 0, 1, 0], [], []>} : vector<8x32xf32>, vector<8x32xf32>, vector<8x8xf32> -> vector<8x8xf32>
    %cst_20 = arith.constant 0.176776692 : f32
    %20 = vector.broadcast %cst_20 : f32 to vector<8x8xf32>
    %21 = arith.mulf %19, %20 : vector<8x8xf32>
    %cst_21 = arith.constant dense<0xFF800000> : vector<8xf32>
    %22 = vector.multi_reduction <maximumf>, %21, %cst_21 [1] : vector<8x8xf32> to vector<8xf32>
    %23 = vector.shape_cast %22 : vector<8xf32> to vector<8x1xf32>
    %24 = vector.broadcast %23 : vector<8x1xf32> to vector<8x8xf32>
    %25 = arith.subf %21, %24 : vector<8x8xf32>
    %26 = math.exp %25 : vector<8x8xf32>
    %cst_22 = arith.constant dense<0.000000e+00> : vector<8xf32>
    %27 = vector.multi_reduction <add>, %26, %cst_22 [1] : vector<8x8xf32> to vector<8xf32>
    %28 = vector.shape_cast %27 : vector<8xf32> to vector<8x1xf32>
    %29 = vector.broadcast %28 : vector<8x1xf32> to vector<8x8xf32>
    %30 = arith.divf %26, %29 : vector<8x8xf32>
    %cst_23 = arith.constant dense<0.000000e+00> : vector<8x32xf32>
    %31 = tpu.matmul %30, %18, %cst_23 {dimension_numbers = #tpu.dot_dimension_numbers<[1], [0], [0], [1], [0, 0, 1, 1], [], []>} : vector<8x8xf32>, vector<8x32xf32>, vector<8x32xf32> -> vector<8x32xf32>
    %c0_24 = arith.constant 0 : index
    %c0_25 = arith.constant 0 : index
    %32 = vector.load %arg7[%c0_24, %c0_25] : memref<32x32xf32, #tpu.memory_space<vmem>>, vector<32x32xf32>
    %cst_26 = arith.constant dense<0.000000e+00> : vector<8x32xf32>
    %33 = tpu.matmul %31, %32, %cst_26 {dimension_numbers = #tpu.dot_dimension_numbers<[1], [0], [0], [1], [0, 0, 1, 1], [], []>} : vector<8x32xf32>, vector<32x32xf32>, vector<8x32xf32> -> vector<8x32xf32>
    %c0_27 = arith.constant 0 : index
    %c0_28 = arith.constant 0 : index
    %34 = vector.load %arg11[%c0_27, %c0_28] : memref<1x32xf32, #tpu.memory_space<vmem>>, vector<1x32xf32>
    %35 = vector.broadcast %34 : vector<1x32xf32> to vector<8x32xf32>
    %36 = arith.addf %33, %35 : vector<8x32xf32>
    %37 = arith.addf %36, %1 : vector<8x32xf32>
    %cst_29 = arith.constant dense<0.000000e+00> : vector<8xf32>
    %38 = vector.multi_reduction <add>, %37, %cst_29 [1] : vector<8x32xf32> to vector<8xf32>
    %39 = vector.shape_cast %38 : vector<8xf32> to vector<8x1xf32>
    %cst_30 = arith.constant 3.200000e+01 : f32
    %40 = vector.broadcast %cst_30 : f32 to vector<8x1xf32>
    %41 = arith.divf %39, %40 : vector<8x1xf32>
    %42 = vector.broadcast %41 : vector<8x1xf32> to vector<8x32xf32>
    %43 = arith.subf %37, %42 : vector<8x32xf32>
    %44 = arith.mulf %43, %43 : vector<8x32xf32>
    %cst_31 = arith.constant dense<0.000000e+00> : vector<8xf32>
    %45 = vector.multi_reduction <add>, %44, %cst_31 [1] : vector<8x32xf32> to vector<8xf32>
    %46 = vector.shape_cast %45 : vector<8xf32> to vector<8x1xf32>
    %cst_32 = arith.constant 3.200000e+01 : f32
    %47 = vector.broadcast %cst_32 : f32 to vector<8x1xf32>
    %48 = arith.divf %46, %47 : vector<8x1xf32>
    %cst_33 = arith.constant 9.99999996E-13 : f32
    %49 = vector.broadcast %cst_33 : f32 to vector<8x1xf32>
    %50 = arith.addf %48, %49 : vector<8x1xf32>
    %51 = math.rsqrt %50 : vector<8x1xf32>
    %52 = vector.broadcast %51 : vector<8x1xf32> to vector<8x32xf32>
    %53 = arith.mulf %43, %52 : vector<8x32xf32>
    %c0_34 = arith.constant 0 : index
    %c0_35 = arith.constant 0 : index
    %54 = vector.load %arg12[%c0_34, %c0_35] : memref<1x32xf32, #tpu.memory_space<vmem>>, vector<1x32xf32>
    %55 = vector.broadcast %54 : vector<1x32xf32> to vector<8x32xf32>
    %56 = arith.mulf %53, %55 : vector<8x32xf32>
    %c0_36 = arith.constant 0 : index
    %c0_37 = arith.constant 0 : index
    %57 = vector.load %arg13[%c0_36, %c0_37] : memref<1x32xf32, #tpu.memory_space<vmem>>, vector<1x32xf32>
    %58 = vector.broadcast %57 : vector<1x32xf32> to vector<8x32xf32>
    %59 = arith.addf %56, %58 : vector<8x32xf32>
    %c0_38 = arith.constant 0 : index
    %c0_39 = arith.constant 0 : index
    %c0_40 = arith.constant 0 : index
    %60 = vector.load %arg14[%c0_38, %c0_39, %c0_40] : memref<1x8x32xf32, #tpu.memory_space<vmem>>, vector<1x8x32xf32>
    %61 = vector.shape_cast %60 : vector<1x8x32xf32> to vector<8x32xf32>
    %62 = vector.shape_cast %59 : vector<8x32xf32> to vector<1x8x32xf32>
    tpu.vector_store %arg14[%c0_38, %c0_39, %c0_40], %62 {strides = array<i32>} : memref<1x8x32xf32, #tpu.memory_space<vmem>>, vector<1x8x32xf32>,
    return
  }
  func.func @transform_0(%arg0: i32, %arg1: i32) -> (i32, i32, i32) {
    %c0_i32 = arith.constant 0 : i32
    %c0_i32_0 = arith.constant 0 : i32
    return %arg0, %arg1, %c0_i32 : i32, i32, i32
  }
  func.func @transform_1(%arg0: i32, %arg1: i32) -> (i32, i32, i32) {
    %c0_i32 = arith.constant 0 : i32
    %c0_i32_0 = arith.constant 0 : i32
    %c0_i32_1 = arith.constant 0 : i32
    return %arg0, %c0_i32, %c0_i32_0 : i32, i32, i32
  }
  func.func @transform_2(%arg0: i32, %arg1: i32) -> (i32, i32) {
    %c0_i32 = arith.constant 0 : i32
    %c0_i32_0 = arith.constant 0 : i32
    %c0_i32_1 = arith.constant 0 : i32
    return %c0_i32, %c0_i32_0 : i32, i32
  }
  func.func @transform_3(%arg0: i32, %arg1: i32) -> (i32, i32) {
    %c0_i32 = arith.constant 0 : i32
    %c0_i32_0 = arith.constant 0 : i32
    %c0_i32_1 = arith.constant 0 : i32
    return %c0_i32, %c0_i32_0 : i32, i32
  }
  func.func @transform_4(%arg0: i32, %arg1: i32) -> (i32, i32) {
    %c0_i32 = arith.constant 0 : i32
    %c0_i32_0 = arith.constant 0 : i32
    %c0_i32_1 = arith.constant 0 : i32
    return %c0_i32, %c0_i32_0 : i32, i32
  }
  func.func @transform_5(%arg0: i32, %arg1: i32) -> (i32, i32) {
    %c0_i32 = arith.constant 0 : i32
    %c0_i32_0 = arith.constant 0 : i32
    %c0_i32_1 = arith.constant 0 : i32
    return %c0_i32, %c0_i32_0 : i32, i32
  }
  func.func @transform_6(%arg0: i32, %arg1: i32) -> (i32, i32) {
    %c0_i32 = arith.constant 0 : i32
    %c0_i32_0 = arith.constant 0 : i32
    %c0_i32_1 = arith.constant 0 : i32
    return %c0_i32, %c0_i32_0 : i32, i32
  }
  func.func @transform_7(%arg0: i32, %arg1: i32) -> (i32, i32) {
    %c0_i32 = arith.constant 0 : i32
    %c0_i32_0 = arith.constant 0 : i32
    %c0_i32_1 = arith.constant 0 : i32
    return %c0_i32, %c0_i32_0 : i32, i32
  }
  func.func @transform_8(%arg0: i32, %arg1: i32) -> (i32, i32) {
    %c0_i32 = arith.constant 0 : i32
    %c0_i32_0 = arith.constant 0 : i32
    %c0_i32_1 = arith.constant 0 : i32
    return %c0_i32, %c0_i32_0 : i32, i32
  }
  func.func @transform_9(%arg0: i32, %arg1: i32) -> (i32, i32) {
    %c0_i32 = arith.constant 0 : i32
    %c0_i32_0 = arith.constant 0 : i32
    %c0_i32_1 = arith.constant 0 : i32
    return %c0_i32, %c0_i32_0 : i32, i32
  }
  func.func @transform_10(%arg0: i32, %arg1: i32) -> (i32, i32) {
    %c0_i32 = arith.constant 0 : i32
    %c0_i32_0 = arith.constant 0 : i32
    %c0_i32_1 = arith.constant 0 : i32
    return %c0_i32, %c0_i32_0 : i32, i32
  }
  func.func @transform_11(%arg0: i32, %arg1: i32) -> (i32, i32) {
    %c0_i32 = arith.constant 0 : i32
    %c0_i32_0 = arith.constant 0 : i32
    %c0_i32_1 = arith.constant 0 : i32
    return %c0_i32, %c0_i32_0 : i32, i32
  }
  func.func @transform_12(%arg0: i32, %arg1: i32) -> (i32, i32, i32) {
    %c0_i32 = arith.constant 0 : i32
    %c0_i32_0 = arith.constant 0 : i32
    return %arg0, %arg1, %c0_i32 : i32, i32, i32
  }
}

</mosaic_0001>

<bundles_post_ra>
// kernel: tpu_custom_call.1
= control target key start
LH: loop header
LB: loop body
LE: loop exit
PB: predicated region body
PF: predicated region fallthrough
CT: control target
= control target key end

     0   :  { %s2232_s0 = inlined_call_operand.hbm [shape: f32[2,8,32], index: 0, kind: input, shape index: {}]   ;;  %s2233_s1 = inlined_call_operand.hbm [shape: f32[2,8,32], index: 1, kind: input, shape index: {}]   ;;  %s2234_s2 = inlined_call_operand.hbm [shape: f32[32,32], index: 2, kind: input, shape index: {}]   ;;  %s2235_s3 = inlined_call_operand.hbm [shape: f32[32,32], index: 3, kind: input, shape index: {}]   ;;  %s2236_s4 = inlined_call_operand.hbm [shape: f32[32,32], index: 4, kind: input, shape index: {}]   ;;  %s2237_s5 = inlined_call_operand.hbm [shape: f32[32,32], index: 5, kind: input, shape index: {}]   ;;  %s2238_s6 = inlined_call_operand.vmem [shape: f32[1,32], index: 6, kind: input, shape index: {}]   ;;  %s2239_s7 = inlined_call_operand.vmem [shape: f32[1,32], index: 7, kind: input, shape index: {}]   ;;  %s2240_s8 = inlined_call_operand.vmem [shape: f32[1,32], index: 8, kind: input, shape index: {}]   ;;  %s2241_s9 = inlined_call_operand.vmem [shape: f32[1,32], index: 9, kind: input, shape index: {}]   ;;  %s2242_s10 = inlined_call_operand.vmem [shape: f32[1,32], index: 10, kind: input, shape index: {}]   ;;  %s2243_s11 = inlined_call_operand.vmem [shape: f32[1,32], index: 11, kind: input, shape index: {}]   ;;  %s2244_s12 = inlined_call_operand.hbm [shape: f32[2,8,32], index: 12, kind: output, shape index: {}]  }
   0x1   :  { %2251 = sst [smem:[#allocation22_spill]] %s2234_s2 }
   0x2   :  { %2252 = sst [smem:[#allocation23_spill]] %s2235_s3 }
   0x3   :  { %2253 = sst [smem:[#allocation24_spill]] %s2236_s4 }
   0x4   :  { %2254 = sst [smem:[#allocation25_spill]] %s2237_s5 }
   0x5   :  { %2255 = sst [smem:[#allocation26_spill]] %s2240_s8 }
   0x6   :  { %2256 = sst [smem:[#allocation27_spill]] %s2241_s9 }
   0x7   :  { %2257 = sst [smem:[#allocation28_spill]] %s2242_s10 }
   0x8   :  { %2258 = sst [smem:[#allocation29_spill]] %s2243_s11 }
   0x9   :  { %2259 = sst [smem:[#allocation30_spill]] %s2244_s12 }
   0xa   :  { %17 = vsyncpa [#allocation3], 0 }
   0xb   :  { %19 = vsyncpa [#allocation3 + $0x1], 0 }
   0xc   :  { %20 = vsyncpa [#allocation6], 0 }
   0xd   :  { %22 = vsyncpa [#allocation6 + $0x1], 0 }
   0xe   :  { %23 = vsyncpa [#allocation9], 0 }
   0xf   :  { %24 = vsyncpa [#allocation12], 0 }
  0x10   :  { %25 = vsyncpa [#allocation4], 0 }
  0x11   :  { %27 = vsyncpa [#allocation4 + $0x1], 0  ;;  %s1834_s21 = smov 0   ;;  %s1836_s22 = smov 0  }
  0x12   :  { %s1838_s23 = smov 0   ;;  %s1840_s24 = smov 0  }
  0x13   :  { %s1842_s25 = smov 0   ;;  %s1844_s26 = smov 0  }
  0x14 LB: > { %2260 = sst [smem:[#allocation20_spill]] %s1747_s24  ;;  %s1865_s27 = sadd.s32 4294967295, %s1755_s26   ;;  %s1755_s26 = sphi %s1844_s26, %s33_s26   ;;  %s1751_s25 = sphi %s1842_s25, %s2297_s25   ;;  %s1747_s24 = sphi %s1840_s24, %s2296_s24   ;;  %s1743_s23 = sphi %s1838_s23, %s2295_s23   ;;  %s1739_s22 = sphi %s1836_s22, %s2294_s22   ;;  %s1735_s21 = sphi %s1834_s21, %s2293_s21  }
  0x15   : > { %p1229_p0 = scmp.ge.s32.totalorder %s1755_s26, 1  ;;  %p2246_p1 = scmp.eq.s32.totalorder %s1865_s27, 0 }
  0x16   : > { %p342_p2 = scmp.lt.s32.totalorder %s1755_s26, 3  ;;  %s1757_s29 = smov [#allocation7]  }
  0x17   : > { %s354_s30 = sshll.u32 %s1757_s29, 4  ;;  %s1758_s14 = smov [#allocation8]   ;;  %s1874_s30 = int_to_ptr.vmem [resolvable:$true] %s354_s30 }
  0x18   : > { %p1870_p3 = pnand %p1229_p0, %p342_p2  ;;  %s367_s15 = sshll.u32 %s1758_s14, 4  ;;  %s1885_s15 = int_to_ptr.vmem [resolvable:$true] %s367_s15 }
  0x19   : > { %s1759_s16 = smov [#allocation10]   ;;  %s2263_s2 = sld [smem:[#allocation22_spill]] }
  0x1a   : > { %s2261_s28 = scalar_select %p1870_p3, 1, 0 }
  0x1b   : > { %p1388_p4 = pneg %p1870_p3  ;;  %s1887_s17 = sshll.u32 %s1759_s16, 4  ;;  %s381_s17 = int_to_ptr.vmem [resolvable:$true] %s1887_s17 }
  0x1d   : > { %p1881_p6 = pnand %p1388_p4, %p2246_p1 }
  0x1f   : > { %s1485_s20 = scalar_lea.hbm %s2263_s2, 512  ;;  %p1897_p8 = pneg %p1881_p6 }
  0x20   : > { %p1486_p7 = scmp.ne.s32.totalorder %s2263_s2, %s1485_s20  ;;  %p1492_p11 = scmp.lt.u32.totalorder %s1485_s20, %s2263_s2 }
  0x22   : > { %p1488_p9 = pnand %p1897_p8, %p1486_p7 }
  0x24   : > { %p1489_p10 = pneg %p1488_p9 }
  0x26   : > { %p1494_p12 = pnand %p1492_p11, %p1489_p10 }
  0x28   : > { %1497 = shalt.err (!%p1494_p12)
}
  0x29   : > { %s1498_s12 = scalar_lea.vmem %s1874_s30, 512  ;;  %p1506_p4 = scmp.lt.s32.totalorder %s1874_s30, %s1874_s30 }
  0x2a   : > { %p1499_p13 = scmp.ne.s32.totalorder %s1874_s30, %s1498_s12  ;;  %p1507_p5 = scmp.lt.s32.totalorder %s1498_s12, %s1498_s12 }
  0x2c   : > { %p1501_p0 = pnand %p1499_p13, %p1897_p8  ;;  %p1508_p7 = por %p1507_p5, %p1506_p4 }
  0x2e   : > { %p1502_p2 = pneg %p1501_p0 }
  0x30   : > { %p1509_p9 = pnand %p1508_p7, %p1502_p2 }
  0x32   : > { %1512 = shalt.err (!%p1509_p9)
}
  0x33   : > { %s1760_s18 = smov 128   ;;  %s1761_s19 = smov 8  }
  0x34   : > { %1391 = dma.hbm_to_vmem [thread:$0]  (!%p1881_p6), %s2263_s2, 512, %s1874_s30, [#allocation6], %s1760_s18, %s1760_s18, %s1761_s19  }
  0x35   : > { %s2265_s3 = sld [smem:[#allocation23_spill]] }
  0x3b   : > { %s1513_s12 = scalar_lea.hbm %s2265_s3, 512 }
  0x3c   : > { %p1514_p5 = scmp.ne.s32.totalorder %s2265_s3, %s1513_s12  ;;  %p1520_p12 = scmp.lt.u32.totalorder %s1513_s12, %s2265_s3 }
  0x3e   : > { %p1516_p10 = pnand %p1514_p5, %p1897_p8 }
  0x40   : > { %p1517_p11 = pneg %p1516_p10 }
  0x42   : > { %p1522_p13 = pnand %p1520_p12, %p1517_p11 }
  0x44   : > { %1525 = shalt.err (!%p1522_p13)
}
  0x45   : > { %s1526_s30 = scalar_lea.vmem %s1885_s15, 512  ;;  %p1534_p7 = scmp.lt.s32.totalorder %s1885_s15, %s1885_s15 }
  0x46   : > { %p1527_p0 = scmp.ne.s32.totalorder %s1885_s15, %s1526_s30  ;;  %p1535_p9 = scmp.lt.s32.totalorder %s1526_s30, %s1526_s30 }
  0x48   : > { %p1529_p2 = pnand %p1527_p0, %p1897_p8  ;;  %p1536_p5 = por %p1535_p9, %p1534_p7 }
  0x4a   : > { %p1530_p4 = pneg %p1529_p2 }
  0x4c   : > { %p1537_p10 = pnand %p1536_p5, %p1530_p4 }
  0x4e   : > { %1540 = shalt.err (!%p1537_p10)
}
  0x4f   : > { %1394 = dma.hbm_to_vmem [thread:$0]  (!%p1881_p6), %s2265_s3, 512, %s1885_s15, [#allocation9], %s1760_s18, %s1760_s18, %s1761_s19  }
  0x50   : > { %s2266_s4 = sld [smem:[#allocation24_spill]] }
  0x56   : > { %s1541_s20 = scalar_lea.hbm %s2266_s4, 512 }
  0x57   : > { %p1542_p11 = scmp.ne.s32.totalorder %s2266_s4, %s1541_s20  ;;  %p1548_p0 = scmp.lt.u32.totalorder %s1541_s20, %s2266_s4 }
  0x59   : > { %p1544_p12 = pnand %p1542_p11, %p1897_p8 }
  0x5b   : > { %p1545_p13 = pneg %p1544_p12 }
  0x5d   : > { %p1550_p2 = pnand %p1548_p0, %p1545_p13 }
  0x5f   : > { %1553 = shalt.err (!%p1550_p2)
}
  0x60   : > { %s1554_s30 = scalar_lea.vmem %s381_s17, 512  ;;  %p1562_p5 = scmp.lt.s32.totalorder %s381_s17, %s381_s17 }
  0x61   : > { %p1555_p4 = scmp.ne.s32.totalorder %s381_s17, %s1554_s30  ;;  %p1563_p10 = scmp.lt.s32.totalorder %s1554_s30, %s1554_s30 }
  0x63   : > { %p1557_p7 = pnand %p1555_p4, %p1897_p8  ;;  %p1564_p1 = por %p1563_p10, %p1562_p5 }
  0x65   : > { %p1558_p9 = pneg %p1557_p7 }
  0x67   : > { %p1565_p3 = pnand %p1564_p1, %p1558_p9 }
  0x69   : > { %1568 = shalt.err (!%p1565_p3)
}
  0x6a   : > { %1397 = dma.hbm_to_vmem [thread:$0]  (!%p1881_p6), %s2266_s4, 512, %s381_s17, [#allocation9], %s1760_s18, %s1760_s18, %s1761_s19  }
  0x6b   : > { %s1762_s9 = smov [#allocation11]   ;;  %s2267_s5 = sld [smem:[#allocation25_spill]] }
  0x6c   : > { %s393_s10 = sshll.u32 %s1762_s9, 4  ;;  %s394_s10 = int_to_ptr.vmem [resolvable:$true] %s393_s10 }
  0x71   : > { %s1569_s29 = scalar_lea.hbm %s2267_s5, 512 }
  0x72   : > { %p1570_p1 = scmp.ne.s32.totalorder %s2267_s5, %s1569_s29  ;;  %p1576_p12 = scmp.lt.u32.totalorder %s1569_s29, %s2267_s5 }
  0x74   : > { %p1572_p3 = pnand %p1570_p1, %p1897_p8 }
  0x76   : > { %p1573_p11 = pneg %p1572_p3 }
  0x78   : > { %p1578_p13 = pnand %p1576_p12, %p1573_p11 }
  0x7a   : > { %1581 = shalt.err (!%p1578_p13)
}
  0x7b   : > { %s1582_s17 = scalar_lea.vmem %s394_s10, 512  ;;  %p1590_p7 = scmp.lt.s32.totalorder %s394_s10, %s394_s10 }
  0x7c   : > { %p1583_p0 = scmp.ne.s32.totalorder %s394_s10, %s1582_s17  ;;  %p1591_p9 = scmp.lt.s32.totalorder %s1582_s17, %s1582_s17 }
  0x7e   : > { %p1585_p2 = pnand %p1583_p0, %p1897_p8  ;;  %p1592_p5 = por %p1591_p9, %p1590_p7 }
  0x80   : > { %p1586_p4 = pneg %p1585_p2 }
  0x82   : > { %p1593_p10 = pnand %p1592_p5, %p1586_p4 }
  0x84   : > { %1596 = shalt.err (!%p1593_p10)
}
  0x85   : > { %1400 = dma.hbm_to_vmem [thread:$0]  (!%p1881_p6), %s2267_s5, 512, %s394_s10, [#allocation12], %s1760_s18, %s1760_s18, %s1761_s19  }
  0x86   : > { %s1228_s11 = sadd.s32 4294967294, %s1755_s26   ;;  %s45_s13 = sadd.s32 1, %s1751_s25 }
  0x87   : > { %p47_p8 = scmp.ge.s32.totalorder %s45_s13, 2  ;;  %s54_s9 = sadd.s32 1, %s1743_s23 }
  0x88   : > { %p61_p1 = scmp.ne.s32.totalorder %s1743_s23, %s1739_s22  ;;  %p62_p3 = scmp.eq.s32.totalorder %s1755_s26, 0 }
  0x89   : > { %s2299_s13 = smov (%p47_p8, %s45_s13), 0  ;;  %p67_p12 = scmp.ne.s32.totalorder %s1739_s22, %s1735_s21 }
  0x8a   : > { %2268 = sst [smem:[#allocation21_spill]] %s2299_s13  ;;  %p1998_p11 = por %p62_p3, %p61_p1 }
  0x8b   : > { %s49_s18 = ssub.s32 %s1751_s25, %s2299_s13  ;;  %p329_p6 = scmp.eq.s32.totalorder %s1865_s27, 1 }
  0x8c   : > { %p52_p13 = scmp.eq.s32.totalorder %s49_s18, 0  ;;  %p2270_p0 = scmp.eq.s32.totalorder %s1865_s27, 0 }
  0x8d   : > { %p2013_p4 = por %p329_p6, %p61_p1  ;;  %p335_p7 = scmp.eq.s32.totalorder %s1228_s11, 1 }
  0x8e   : > { %p2009_p2 = por %p2270_p0, %p67_p12  ;;  %p1416_p5 = scmp.lt.s32.totalorder %s1755_s26, 2 }
  0x8f   : > { %s2272_s10 = scalar_select %p2013_p4, 1, 0 }
  0x90   : > { %s2271_s19 = scalar_select %p2009_p2, 1, 0 }
  0x91   : > { %s2018_s20 = scalar_select %p52_p13, %s1743_s23, %s54_s9  }
  0x92   : > { %p2020_p9 = por %p335_p7, %p67_p12  ;;  %s425_s14 = sand.u32 1, %s1743_s23  }
  0x93   : > { %s1236_s16 = sshll.u32 %s1751_s25, 7  ;;  %s2027_s12 = sshll.u32 %s425_s14, 3 }
  0x94   : > { %s2273_s29 = scalar_select %p2020_p9, 1, 0 }
  0x95   : > { %s2032_s15 = scalar_lea.hbm %s2232_s0, %s1236_s16  ;;  %s429_s8 = scalar_lea.vmem [#allocation2], %s2027_s12 }
  0x96   : > { %s437_s11 = sshll.u32 %s429_s8, 4  ;;  %p2037_p10 = pnand %p1416_p5, %p1998_p11  ;;  %s2041_s11 = int_to_ptr.vmem [resolvable:$true] %s437_s11 }
  0x97   : > { %s2046_s17 = scalar_lea.hbm %s2233_s1, %s1236_s16  ;;  %s426_s2 = scalar_lea.sflag [#allocation3], %s425_s14 }
  0x98   : > { %s1597_s3 = scalar_lea.hbm %s2032_s15, 128  ;;  %p1599_p1 = pneg %p2037_p10 }
  0x99   : > { %p1598_p8 = scmp.ne.s32.totalorder %s2032_s15, %s1597_s3  ;;  %s1602_s4 = scalar_lea.hbm %s2232_s0, 256 }
  0x9a   : > { %p1603_p12 = scmp.lt.u32.totalorder %s2032_s15, %s2232_s0  ;;  %p1604_p6 = scmp.lt.u32.totalorder %s1602_s4, %s1597_s3 }
  0x9b   : > { %p1600_p3 = pnand %p1599_p1, %p1598_p8  ;;  %p1606_p0 = scmp.lt.u32.totalorder %s1597_s3, %s2032_s15 }
  0x9c   : > { %p1605_p13 = por %p1604_p6, %p1603_p12 }
  0x9d   : > { %p1601_p11 = pneg %p1600_p3 }
  0x9e   : > { %p1607_p7 = por %p1606_p0, %p1605_p13 }
  0xa0   : > { %p1608_p5 = pnand %p1607_p7, %p1601_p11 }
  0xa2   : > { %1611 = shalt.err (!%p1608_p5)
}
  0xa3   : > { %s1612_s14 = scalar_lea.vmem %s2041_s11, 128  ;;  %s1763_s16 = smov [#allocation2]  }
  0xa4   : > { %p1613_p8 = scmp.ne.s32.totalorder %s2041_s11, %s1612_s14  ;;  %s1617_s18 = sshll.u32 %s1763_s16, 4  ;;  %s1618_s18 = int_to_ptr.vmem [resolvable:$false] %s1617_s18 }
  0xa5   : > { %s1619_s5 = scalar_lea.vmem %s1618_s18, 256  ;;  %p1620_p4 = scmp.lt.s32.totalorder %s2041_s11, %s1618_s18 }
  0xa6   : > { %p1615_p3 = pnand %p1613_p8, %p1599_p1  ;;  %p1621_p12 = scmp.lt.s32.totalorder %s1619_s5, %s1612_s14 }
  0xa8   : > { %p1616_p9 = pneg %p1615_p3  ;;  %p1622_p6 = por %p1621_p12, %p1620_p4 }
  0xaa   : > { %p1623_p13 = pnand %p1622_p6, %p1616_p9 }
  0xac   : > { %1626 = shalt.err (!%p1623_p13)
}
  0xad   : > { %1404 = dma.hbm_to_vmem [thread:$0]  (!%p2037_p10), %s2032_s15, 128, %s2041_s11, %s426_s2  }
  0xae   : > { %s444_s3 = sand.u32 1, %s1755_s26   ;;  %s448_s4 = scalar_lea.vmem [#allocation5], %s2027_s12 }
  0xaf   : > { %s455_s13 = sshll.u32 %s448_s4, 4  ;;  %s445_s30 = scalar_lea.sflag [#allocation6], %s444_s3  ;;  %s456_s13 = int_to_ptr.vmem [resolvable:$true] %s455_s13 }
  0xb0   : > { %s1627_s24 = scalar_lea.hbm %s2046_s17, 128  ;;  %s1632_s16 = scalar_lea.hbm %s2233_s1, 256 }
  0xb1   : > { %p1628_p4 = scmp.ne.s32.totalorder %s2046_s17, %s1627_s24  ;;  %p1633_p0 = scmp.lt.u32.totalorder %s2046_s17, %s2233_s1 }
  0xb2   : > { %p1634_p7 = scmp.lt.u32.totalorder %s1632_s16, %s1627_s24  ;;  %p1636_p8 = scmp.lt.u32.totalorder %s1627_s24, %s2046_s17 }
  0xb3   : > { %p1630_p9 = pnand %p1628_p4, %p1599_p1 }
  0xb4   : > { %p1635_p5 = por %p1634_p7, %p1633_p0 }
  0xb5   : > { %p1631_p11 = pneg %p1630_p9 }
  0xb6   : > { %p1637_p3 = por %p1636_p8, %p1635_p5 }
  0xb8   : > { %p1638_p12 = pnand %p1637_p3, %p1631_p11 }
  0xba   : > { %1641 = shalt.err (!%p1638_p12)
}
  0xbb   : > { %s1642_s2 = scalar_lea.vmem %s456_s13, 128  ;;  %s1764_s12 = smov [#allocation5]  }
  0xbc   : > { %p1643_p6 = scmp.ne.s32.totalorder %s456_s13, %s1642_s2  ;;  %s1647_s15 = sshll.u32 %s1764_s12, 4  ;;  %s1648_s15 = int_to_ptr.vmem [resolvable:$false] %s1647_s15 }
  0xbd   : > { %s1649_s11 = scalar_lea.vmem %s1648_s15, 256  ;;  %p1650_p9 = scmp.lt.s32.totalorder %s456_s13, %s1648_s15 }
  0xbe   : > { %p1645_p13 = pnand %p1643_p6, %p1599_p1  ;;  %p1651_p2 = scmp.lt.s32.totalorder %s1649_s11, %s1642_s2 }
  0xc0   : > { %p1646_p4 = pneg %p1645_p13  ;;  %p1652_p0 = por %p1651_p2, %p1650_p9 }
  0xc2   : > { %p1653_p7 = pnand %p1652_p0, %p1646_p4 }
  0xc4   : > { %1656 = shalt.err (!%p1653_p7)
}
  0xc5   : > { %1407 = dma.hbm_to_vmem [thread:$0]  (!%p2037_p10), %s2046_s17, 128, %s456_s13, %s445_s30  }
  0xc6   : > { %p2275_p11 = scmp.ne.s32.totalorder %s2261_s28, 0 }
  0xc7   : > { %s2097_s3 = sand.u32 (!%p2275_p11), 1, %s1739_s22   ;;  %p2276_p2 = scmp.ne.s32.totalorder (!%p2275_p11), %s2271_s19, 0 }
  0xc8   : > { %464 = sbr.rel (%p2275_p11) target bundleno = 1732 (0x6c4), region = 68  ;;  %s2100_s4 = sshll.u32 (!%p2275_p11), %s2097_s3, 3 }
  0xc9   : > { %s467_s24 = scalar_lea.sflag (!%p2275_p11), [#allocation3], %s2097_s3  ;;  %s470_s8 = scalar_lea.vmem (!%p2275_p11), [#allocation2], %s2100_s4 }
  0xcf   : > { %1710 = dma.done.wait (%p2276_p2), %s467_s24, 128  }
  0xd0   : > { %1712 = vsyncadd (%p2276_p2), %s467_s24, 4294967168  ;;  %s475_s28 = sand.u32 1, %s1865_s27   ;;  %s479_s17 = scalar_lea.vmem [#allocation5], %s2100_s4 }
  0xd1   : > { %s476_s9 = scalar_lea.sflag [#allocation6], %s475_s28 }
  0xd2   : > { %1714 = dma.done.wait (%p2276_p2), %s476_s9, 128  }
  0xd3   : > { %1716 = vsyncadd (%p2276_p2), %s476_s9, 4294967168  ;;  %p2277_p10 = scmp.eq.s32.totalorder %s1865_s27, 0 }
  0xd5   : > { %1718 = dma.done.wait (%p2277_p10), [#allocation6], 512   ;;  %p2278_p1 = pmov %p2277_p10 }
  0xd7   : > { %1720 = vsyncadd (%p2278_p1), [#allocation6], 4294966784  ;;  %p2279_p5 = pmov %p2278_p1 }
  0xd8   : > { %p2280_p8 = pmov %p2278_p1 }
  0xd9   : > { %1722 = dma.done.wait (%p2279_p5), [#allocation9], 1024  }
  0xda   : > { %1724 = vsyncadd (%p2280_p8), [#allocation9], 4294966272  ;;  %p2281_p3 = pmov %p2278_p1 }
  0xdb   : > { %p2282_p12 = pmov %p2278_p1 }
  0xdc   : > { %1726 = dma.done.wait (%p2281_p3), [#allocation12], 512  }
  0xdd   : > { %1728 = vsyncadd (%p2282_p12), [#allocation12], 4294966784  ;;  %v1765_v0 = vmov 0.0|0.0   ;;  %vm1766_vm0 = vmmov 0   ;;  %v1767_v1 = vmov 0.0   ;;  %v628_v2 = vld [vmem:[#allocation8] sm:$0xff] }
  0xde   : > { %1348 = vmatprep.subr.bf16.mxu1 %v1765_v0  ;;  %1342 = vmatprep.subr.bf16.mxu0 %v1765_v0  ;;  %v629_v3 = vld [vmem:[#allocation8 + $0x8] sm:$0xff]  ;;  %v543_v4 = vld [vmem:[#allocation7] sm:$0xff]  ;;  %v630_v7 = vld [vmem:[#allocation8 + $0x10] sm:$0xff]  ;;  %vm554_vm1 = vcmask 261120   ;;  %vm870_vm2 = vcmask 64512   ;;  %s2283_s18 = sld [smem:[#allocation26_spill]] }
  0xdf   : > { %1307 = vmatprep.mubr.msk.f32.mxu1 %vm1766_vm0, %v1767_v1  ;;  %1296 = vmatprep.mubr.msk.f32.mxu0 %vm1766_vm0, %v1767_v1  ;;  %v1349_v5 = vpack.c.bf16 %v629_v3, %v628_v2  ;;  %v544_v6 = vld [vmem:[#allocation7 + $0x8] sm:$0xff]  ;;  %v631_v8 = vld [vmem:[#allocation8 + $0x18] sm:$0xff]  ;;  %v545_v10 = vld [vmem:[#allocation7 + $0x10] sm:$0xff]  ;;  %s2284_s12 = sld [smem:[#allocation27_spill]]  ;;  %s2285_s15 = sld [smem:[#allocation20_spill]] }
  0xe0   : > { %v1343_v9 = vpack.c.bf16 %v544_v6, %v543_v4  ;;  %v546_v11 = vld [vmem:[#allocation7 + $0x18] sm:$0xff]  ;;  %v1352_v12 = vpack.c.bf16 %v631_v8, %v630_v7  ;;  %v2136_v15 = vld [vmem:[%s470_s8] sm:$0xff]  ;;  %v714_v26 = vld [vmem:[#allocation10 + $0x10] sm:$0xff]  ;;  %s2286_s8 = sld [smem:[#allocation28_spill]]  ;;  %s540_s19 = scalar_lea.vmem [#allocation13], %s2100_s4 }
  0xe1   : > { %1350 = vmatpush3.bf16.msra.mxu1 %v1349_v5  ;;  %v1346_v13 = vpack.c.bf16 %v546_v11, %v545_v10  ;;  %v542_v14 = vld [vmem:[%s479_s17] sm:$0xff]  ;;  %v1249_v16 = vld [vmem:[%s2239_s7] ss:$0 sm:$0xff]  ;;  %v713_v25 = vld [vmem:[#allocation10 + $0x8] sm:$0xff]  ;;  %s2287_s17 = sld [smem:[#allocation29_spill]]  ;;  %s1086_s13 = sshll.u32 %s540_s19, 4  ;;  %s2184_s13 = int_to_ptr.vmem [resolvable:$true] %s1086_s13 }
  0xe2   : > { %1344 = vmatpush3.bf16.msra.mxu0 %v1343_v9  ;;  %1351 = vmatprep.subr.bf16.mxu1 %v1765_v0  ;;  %v1247_v17 = vld [vmem:[%s2238_s6] ss:$0 sm:$0xff]  ;;  %v715_v28 = vld [vmem:[#allocation10 + $0x18] sm:$0xff]  ;;  %v956_v44 = vld [vmem:[#allocation11 + $0x8] sm:$0xff]  ;;  %s2288_s16 = sld [smem:[#allocation30_spill]]  ;;  %s1072_s5 = scalar_lea.sflag [#allocation4], %s2097_s3 }
  0xe3   : > { %1345 = vmatprep.subr.bf16.mxu0 %v1765_v0  ;;  %v712_v24 = vld [vmem:[#allocation10] sm:$0xff]  ;;  %v1358_v29 = vpack.c.bf16 %v715_v28, %v714_v26  ;;  %v957_v45 = vld [vmem:[#allocation11 + $0x10] sm:$0xff]  ;;  %v958_v47 = vld [vmem:[#allocation11 + $0x18] sm:$0xff]  ;;  %s1657_s2 = scalar_lea.vmem %s2184_s13, 128  ;;  %p2289_p13 = scmp.ne.s32.totalorder %s2272_s10, 0 }
  0xe4   : > { %v1355_v27 = vpack.c.bf16 %v713_v25, %v712_v24  ;;  %v1251_v40 = vld [vmem:[%s2283_s18] ss:$0 sm:$0xff]  ;;  %v1364_v48 = vpack.c.bf16 %v958_v47, %v957_v45  ;;  %p1658_p6 = scmp.ne.s32.totalorder %s2184_s13, %s1657_s2  ;;  %s1768_s4 = smov [#allocation13]  }
  0xe5   : > { %1353 = vmatpush3.bf16.msra.mxu1 %v1352_v12  ;;  %v955_v43 = vld [vmem:[#allocation11] sm:$0xff]  ;;  %s1261_s27 = sshll.u32 %s2285_s15, 7 }
  0xe6   : > { %1347 = vmatpush3.bf16.msra.mxu0 %v1346_v13  ;;  %1321 = vmatprep.subr.mxu1 %v1767_v1  ;;  %v1361_v46 = vpack.c.bf16 %v956_v44, %v955_v43  ;;  %v1256_v54 = vld [vmem:[%s2284_s12] ss:$0 sm:$0xff]  ;;  %p1659_p4 = pnand %p1658_p6, %p2289_p13  ;;  %s1661_s12 = sshll.u32 %s1768_s4, 4  ;;  %s1662_s12 = int_to_ptr.vmem [resolvable:$false] %s1661_s12 }
  0xe7   : > { %1354 = vmatprep.subr.bf16.mxu0 %v1765_v0  ;;  %v1258_v5 = vld [vmem:[%s2286_s8] ss:$0 sm:$0xff]  ;;  %s1663_s15 = scalar_lea.vmem %s1662_s12, 256  ;;  %p1664_p0 = scmp.lt.s32.totalorder %s2184_s13, %s1662_s12 }
  0xe8   : > { %1308 = vmatmul.mubr.msk.f32.vlgmr.msra.gmra.mrb[0].mxu1 %vm554_vm1, %v542_v14  ;;  %v1259_v7 = vld [vmem:[%s2287_s17] ss:$0 sm:$0xff]  ;;  %s2182_s18 = scalar_lea.hbm %s2288_s16, %s1261_s27  ;;  %p1660_p9 = pneg %p1659_p4 }
  0xe9   : > { %1297 = vmatmul.mubr.msk.f32.vlgmr.msra.gmra.mrb[0].mxu0 %vm554_vm1, %v2136_v15  ;;  %1323 = vmatprep.mubr.msk.f32.mxu1 %vm1766_vm0, %v1767_v1  ;;  %p1665_p7 = scmp.lt.s32.totalorder %s1663_s15, %s1657_s2 }
  0xea   : > { %1318 = vmatprep.mubr.msk.f32.mxu0 %vm1766_vm0, %v1767_v1  ;;  %1356 = vmatpush3.bf16.msra.mxu0 %v1355_v27 }
  0xeb   : > { %1357 = vmatprep.subr.bf16.mxu0 %v1765_v0  ;;  %p1666_p11 = por %p1665_p7, %p1664_p0 }
  0xed   : > { %p1667_p2 = pnand %p1666_p11, %p1660_p9 }
  0xee   : > { %1359 = vmatpush3.bf16.msra.mxu0 %v1358_v29 }
  0xef   : > { %1360 = vmatprep.subr.bf16.mxu0 %v1765_v0 }
  0xf1   : > { %1319 = vmatmul.mubr.msk.f32.vlgmr.msra.gmra.mrb[2].mxu0 %vm554_vm1, %v542_v14 }
  0xf2   : > { %1339 = vmatprep.mubr.msk.f32.mxu0 %vm1766_vm0, %v1767_v1  ;;  %1362 = vmatpush3.bf16.msra.mxu0 %v1361_v46 }
  0xf3   : > { %1363 = vmatprep.subr.bf16.mxu0 %v1765_v0 }
  0xf6   : > { %1365 = vmatpush3.bf16.msra.mxu0 %v1364_v48 }
 0x1bb   : > { %v708_v18 = vpop.f32.mrb[0].mxu1 }
 0x1bc   : > { %v709_v19 = vadd.f32 %v1249_v16, %v708_v18  ;;  %v1309_v20 = vpop.f32.mrb[1].mxu1  ;;  %v624_v21 = vpop.f32.mrb[0].mxu0 }
 0x1bd   : > { %v625_v22 = vadd.f32 %v1247_v17, %v624_v21  ;;  %v1298_v23 = vpop.f32.mrb[1].mxu0 }
 0x1be   : > { %1322 = vmatpush3.xpose.msk.msra.mxu1 %vm554_vm1, %v709_v19 }
 0x1bf   : > { %1326 = vmatprep.subr.mxu1 %v1767_v1 }
 0x1c1   : > { %1324 = vmatmul.mubr.msk.f32.vlgmr.msra.gmra.mrb[2].mxu1 %vm554_vm1, %v625_v22 }
 0x1c2   : > { %1328 = vmatprep.mubr.msk.f32.mxu1 %vm1766_vm0, %v1767_v1 }
 0x1c4   : > { %v789_v39 = vpop.f32.mrb[2].mxu0 }
 0x1c5   : > { %v1320_v41 = vpop.f32.mrb[3].mxu0  ;;  %v790_v42 = vadd.f32 %v1251_v40, %v789_v39 }
 0x1c7   : > { %1327 = vmatpush3.msra.mxu1 %v790_v42 }
 0x294   : > { %v865_v30 = vpop.f32.mrb[2].mxu1 }
 0x295   : > { %v869_v31 = vmul.f32 0.17677669, %v865_v30  ;;  %v1325_v32 = vpop.f32.mrb[3].mxu1 }
 0x297   : > { %v871_v33 = vsel %vm870_vm2, %v869_v31, -inf }
 0x298   : > { %872 = vmax.xlane.f32.xlu0 %v871_v33 }
 0x325   : > { %v873_v34 = vpop.xlane.xlu0 %872 }
 0x326   : > { %v874_v35 = vsub.f32 %v869_v31, %v873_v34 }
 0x328   : > { %v875_v36 = vmul.f32 1.442695, %v874_v35 }
 0x32a   : > { %1479 = vpow2.f32 %v875_v36 }
 0x334   : > { %v1480_v37 = vpop.eup %1479 }
 0x335   : > { %v877_v38 = vsel %vm870_vm2, %v1480_v37, 0.0 }
 0x336   : > { %878 = vadd.xlane.f32.xlu0 %v877_v38 }
 0x3c3   : > { %v879_v49 = vpop.xlane.xlu0 %878 }
 0x3c4   : > { %1481 = vrcp.f32 %v879_v49 }
 0x3ce   : > { %v1482_v50 = vpop.eup %1481 }
 0x3cf   : > { %v881_v51 = vmul.f32 %v1482_v50, %v1480_v37 }
 0x3d1   : > { %1329 = vmatmul.mubr.msk.f32.vlgmr.msra.gmra.mrb[4].mxu1 %vm870_vm2, %v881_v51 }
 0x4a4   : > { %v951_v52 = vpop.f32.mrb[4].mxu1 }
 0x4a5   : > { %v1330_v53 = vpop.f32.mrb[5].mxu1  ;;  %1340 = vmatmul.mubr.msk.f32.vlgmr.msra.gmra.mrb[4].mxu0 %vm554_vm1, %v951_v52 }
 0x578   : > { %v1035_v55 = vpop.f32.mrb[4].mxu0 }
 0x579   : > { %v1036_v56 = vadd.f32 %v1256_v54, %v1035_v55  ;;  %v1341_v57 = vpop.f32.mrb[5].mxu0 }
 0x57b   : > { %v1039_v58 = vadd.f32 %v1036_v56, %v2136_v15 }
 0x57d   : > { %v1040_v59 = vsel %vm554_vm1, %v1039_v58, 0.0 }
 0x57e   : > { %1041 = vadd.xlane.f32.xlu1 %v1040_v59 }
 0x60b   : > { %v1042_v60 = vpop.xlane.xlu1 %1041 }
 0x60c   : > { %v1044_v61 = vmul.f32 0.03125, %v1042_v60 }
 0x60e   : > { %v1045_v62 = vsub.f32 %v1039_v58, %v1044_v61 }
 0x610   : > { %v1046_v63 = vmul.f32 %v1045_v62, %v1045_v62 }
 0x612   : > { %v1047_v0 = vsel %vm554_vm1, %v1046_v63, 0.0 }
 0x613   : > { %1048 = vadd.xlane.f32.xlu1 %v1047_v0 }
 0x6a0   : > { %v1049_v1 = vpop.xlane.xlu1 %1048 }
 0x6a1   : > { %v1050_v2 = vmul.f32 0.03125, %v1049_v1 }
 0x6a3   : > { %v1051_v3 = vadd.f32 1e-12, %v1050_v2 }
 0x6a5   : > { %1483 = vrsqrt.f32 %v1051_v3 }
 0x6af   : > { %v1484_v4 = vpop.eup %1483 }
 0x6b0   : > { %v1053_v6 = vmul.f32 %v1484_v4, %v1045_v62 }
 0x6b2   : > { %v1061_v8 = vmul.f32 %v1258_v5, %v1053_v6 }
 0x6b4   : > { %v1069_v9 = vadd.f32 %v1259_v7, %v1061_v8 }
 0x6b6   : > { %1070 = vst.msk [vmem:[%s540_s19] sm:$0xff] %vm554_vm1, %v1069_v9 }
 0x6b7   : > { %1670 = shalt.err (!%p1667_p2)
}
 0x6b8   : > { %s1671_s3 = scalar_lea.hbm %s2182_s18, 128  ;;  %s1675_s8 = scalar_lea.hbm %s2288_s16, 256 }
 0x6b9   : > { %p1672_p10 = scmp.ne.s32.totalorder %s2182_s18, %s1671_s3  ;;  %p1676_p8 = scmp.lt.u32.totalorder %s2182_s18, %s2288_s16 }
 0x6ba   : > { %p1677_p3 = scmp.lt.u32.totalorder %s1675_s8, %s1671_s3  ;;  %p1679_p6 = scmp.lt.u32.totalorder %s1671_s3, %s2182_s18 }
 0x6bb   : > { %p1673_p1 = pnand %p1672_p10, %p2289_p13 }
 0x6bc   : > { %p1678_p12 = por %p1677_p3, %p1676_p8 }
 0x6bd   : > { %p1674_p5 = pneg %p1673_p1 }
 0x6be   : > { %p1680_p4 = por %p1679_p6, %p1678_p12 }
 0x6c0   : > { %p1681_p9 = pnand %p1680_p4, %p1674_p5 }
 0x6c2   : > { %1684 = shalt.err (!%p1681_p9)
}
 0x6c3   : > { %1386 = dma.vmem_to_hbm [thread:$0]  (%p2289_p13), %s2184_s13, 128, %s2182_s18, %s1072_s5  }
 0x6c4 PF: > { %s1098_s17 = sand.u32 1, %s1735_s21   ;;  %p2290_p0 = scmp.ne.s32.totalorder %s2273_s29, 0 }
 0x6c5   : > { %p2291_p7 = scmp.ge.s32.totalorder %s1755_s26, 2  ;;  %s1099_s27 = scalar_lea.sflag [#allocation4], %s1098_s17 }
 0x6c7   : > { %p1409_p11 = pnand %p2291_p7, %p2290_p0 }
 0x6c9   : > { %1730 = dma.done.wait (!%p1409_p11), %s1099_s27, 128  }
 0x6ca   : > { %1732 = vsyncadd (!%p1409_p11), %s1099_s27, 4294967168  ;;  %s33_s26 = sadd.s32 1, %s1755_s26   ;;  %s2292_s10 = sld [smem:[#allocation21_spill]] }
 0x6cb   : > { %p30_p2 = scmp.ge.s32.totalorder %s33_s26, 4   ;;  %s2293_s21 = smov %s1739_s22 }
 0x6cc   : > { %s2294_s22 = smov %s1743_s23  ;;  %s2295_s23 = smov %s2018_s20 }
 0x6cd   : > { %s2296_s24 = smov %s1751_s25  ;;  %32 = sbr.rel (!%p30_p2) target bundleno = 20 (0x14), region = 142 }
 0x6d0   : > { %s2297_s25 = smov %s2292_s10 }
 0x6d4   :  { %1104 = vsyncpa [#allocation3], 1 }
 0x6d5   :  { %1106 = vsyncpa [#allocation3 + $0x1], 1 }
 0x6d6   :  { %1107 = vsyncpa [#allocation6], 1 }
 0x6d7   :  { %1109 = vsyncpa [#allocation6 + $0x1], 1 }
 0x6d8   :  { %1110 = vsyncpa [#allocation9], 1 }
 0x6d9   :  { %1111 = vsyncpa [#allocation12], 1 }
 0x6da   :  { %1112 = vsyncpa [#allocation4], 1 }
 0x6db   :  { %1114 = vsyncpa [#allocation4 + $0x1], 1 }

</bundles_post_ra>
